<compile_context>
chip_gen: v7x
topology: tpu7x:2x2x1
jax: 0.10.0
libtpu: 0.0.40
codegen_flags: <defaults>
</compile_context>

<pallas_src>
import jax
import jax.numpy as jnp
from jax.experimental import pallas as pl
from jax.experimental.pallas import tpu as pltpu

LANE = 128                 # vreg lane width
SUBLANE = 8                # vreg sublane count
TARGET_BLOCK_ROWS = 1024   # 1024 x 128 f32 = 512 KiB per input block
NUM_CORES = 2              # leading "parallel" grid axis (uses both TCs on v7x)


def _mse_partial_kernel(x_ref, r_ref, part_ref, acc_ref):
    """Accumulate a per-lane (8, 128) partial sum of squared differences."""
    step = pl.program_id(1)

    @pl.when(step == 0)
    def _():
        acc_ref[...] = jnp.zeros_like(acc_ref)

    d = x_ref[...].astype(jnp.float32) - r_ref[...].astype(jnp.float32)
    d2 = d * d
    # (block_rows, 128) -> (block_rows//8, 8, 128) is a tile-aligned, free view;
    # summing over axis 0 is pure per-lane VPU adds (no cross-lane movement).
    acc_ref[...] += jnp.sum(d2.reshape(-1, SUBLANE, LANE), axis=0)

    @pl.when(step == pl.num_programs(1) - 1)
    def _():
        part_ref[...] = acc_ref[...]


def content_loss(x, reference):
    """Returns (x, loss) with loss = mean((x - reference)**2) over all elements."""
    assert x.shape == reference.shape, "x and reference must have identical shapes"
    total = x.size

    rows = pl.cdiv(total, LANE)
    block_rows = max(
        SUBLANE,
        min(TARGET_BLOCK_ROWS, pl.next_power_of_2(pl.cdiv(rows, NUM_CORES))),
    )
    steps = pl.cdiv(rows, NUM_CORES * block_rows)
    padded_rows = NUM_CORES * steps * block_rows
    pad = padded_rows * LANE - total

    xf = x.reshape(-1)
    rf = reference.reshape(-1)
    if pad:
        # Zero padding in BOTH inputs contributes 0 to the squared-difference sum.
        xf = jnp.concatenate([xf, jnp.zeros((pad,), xf.dtype)])
        rf = jnp.concatenate([rf, jnp.zeros((pad,), rf.dtype)])
    x2d = xf.reshape(padded_rows, LANE)
    r2d = rf.reshape(padded_rows, LANE)

    in_block = (block_rows, LANE)
    in_map = lambda c, i: (c * steps + i, 0)

    itemsize = jnp.dtype(x.dtype).itemsize
    cost = pl.CostEstimate(
        flops=3 * total,  # sub, mul, add per element
        transcendentals=0,
        bytes_accessed=2 * padded_rows * LANE * itemsize
        + NUM_CORES * SUBLANE * LANE * 4,
    )

    partials = pl.pallas_call(
        _mse_partial_kernel,
        out_shape=jax.ShapeDtypeStruct((NUM_CORES * SUBLANE, LANE), jnp.float32),
        grid_spec=pltpu.PrefetchScalarGridSpec(
            num_scalar_prefetch=0,
            grid=(NUM_CORES, steps),
            in_specs=[
                pl.BlockSpec(in_block, in_map),
                pl.BlockSpec(in_block, in_map),
            ],
            out_specs=pl.BlockSpec((SUBLANE, LANE), lambda c, i: (c, 0)),
            scratch_shapes=[pltpu.VMEM((SUBLANE, LANE), jnp.float32)],
        ),
        compiler_params=pltpu.CompilerParams(
            dimension_semantics=("parallel", "arbitrary"),
            vmem_limit_bytes=32 * 1024 * 1024,
        ),
        cost_estimate=cost,
    )(x2d, r2d)

    loss = jnp.sum(partials) / jnp.float32(total)
    return x, loss


if __name__ == "__main__":
    key = jax.random.PRNGKey(0)
    kx, kr, ka, kb = jax.random.split(key, 4)

    # Small NCHW feature maps consistent with the module's usage on conv features.
    N, C, H, W = 2, 4, 16, 16
    x = jax.random.normal(kx, (N, C, H, W), dtype=jnp.float32)
    reference = jax.random.normal(kr, (N, C, H, W), dtype=jnp.float32)  # detached constant

    out_x, loss = content_loss(x, reference)
    jax.block_until_ready((out_x, loss))

    # Sanity check against plain-JAX MSE and passthrough semantics.
    ref_loss = jnp.mean((x - reference) ** 2)
    assert jnp.allclose(loss, ref_loss, rtol=1e-5, atol=1e-6), (loss, ref_loss)
    assert jnp.array_equal(out_x, x)

    # Odd shape exercising the zero-padding / tail-handling path.
    xo = jax.random.normal(ka, (2, 3, 15, 17), dtype=jnp.float32)
    ro = jax.random.normal(kb, (2, 3, 15, 17), dtype=jnp.float32)
    _, loss_o = content_loss(xo, ro)
    jax.block_until_ready(loss_o)
    ref_o = jnp.mean((xo - ro) ** 2)
    assert jnp.allclose(loss_o, ref_o, rtol=1e-5, atol=1e-6), (loss_o, ref_o)

    print("KERNEL_OK")
</pallas_src>

<mosaic_0001>
module attributes {stable_mosaic.version = 11 : i64} {
  func.func @_mse_partial_kernel(%arg0: i32, %arg1: i32, %arg2: memref<8x128xf32, #tpu.memory_space<vmem>>, %arg3: memref<8x128xf32, #tpu.memory_space<vmem>>, %arg4: memref<8x128xf32, #tpu.memory_space<vmem>>, %arg5: memref<8x128xf32, #tpu.memory_space<vmem>>) attributes {dimension_semantics = [#tpu.dimension_semantics<parallel>, #tpu.dimension_semantics<arbitrary>], iteration_bounds = array<i64: 2, 1>, scalar_prefetch = 0 : i64, scratch_operands = 1 : i64, tpu.core_type = #tpu.core_type<tc>, window_params = [{transform_indices = @transform_0, window_bounds = array<i64: 8, 128>}, {transform_indices = @transform_1, window_bounds = array<i64: 8, 128>}, {transform_indices = @transform_2, window_bounds = array<i64: 8, 128>}]} {
    %c0_i32 = arith.constant 0 : i32
    %0 = arith.cmpi eq, %arg1, %c0_i32 : i32
    %1 = arith.extui %0 : i1 to i32
    %c0_i32_0 = arith.constant 0 : i32
    %2 = arith.cmpi ne, %1, %c0_i32_0 : i32
    scf.if %2 {
      %cst_10 = arith.constant 0.000000e+00 : f32
      %15 = vector.broadcast %cst_10 : f32 to vector<8x128xf32>
      %c0_11 = arith.constant 0 : index
      %c0_12 = arith.constant 0 : index
      %16 = vector.load %arg5[%c0_11, %c0_12] : memref<8x128xf32, #tpu.memory_space<vmem>>, vector<8x128xf32>
      tpu.vector_store %arg5[%c0_11, %c0_12], %15 {strides = array<i32>} : memref<8x128xf32, #tpu.memory_space<vmem>>, vector<8x128xf32>,
    } else {
    }
    %c0 = arith.constant 0 : index
    %c0_1 = arith.constant 0 : index
    %3 = vector.load %arg2[%c0, %c0_1] : memref<8x128xf32, #tpu.memory_space<vmem>>, vector<8x128xf32>
    %c0_2 = arith.constant 0 : index
    %c0_3 = arith.constant 0 : index
    %4 = vector.load %arg3[%c0_2, %c0_3] : memref<8x128xf32, #tpu.memory_space<vmem>>, vector<8x128xf32>
    %5 = arith.subf %3, %4 : vector<8x128xf32>
    %6 = arith.mulf %5, %5 : vector<8x128xf32>
    %c0_4 = arith.constant 0 : index
    %c0_5 = arith.constant 0 : index
    %7 = vector.load %arg5[%c0_4, %c0_5] : memref<8x128xf32, #tpu.memory_space<vmem>>, vector<8x128xf32>
    %8 = vector.shape_cast %6 : vector<8x128xf32> to vector<1x8x128xf32>
    %cst = arith.constant dense<0.000000e+00> : vector<8x128xf32>
    %9 = vector.multi_reduction <add>, %8, %cst [0] : vector<1x8x128xf32> to vector<8x128xf32>
    %10 = arith.addf %7, %9 : vector<8x128xf32>
    %c0_6 = arith.constant 0 : index
    %c0_7 = arith.constant 0 : index
    %11 = vector.load %arg5[%c0_6, %c0_7] : memref<8x128xf32, #tpu.memory_space<vmem>>, vector<8x128xf32>
    tpu.vector_store %arg5[%c0_6, %c0_7], %10 {strides = array<i32>} : memref<8x128xf32, #tpu.memory_space<vmem>>, vector<8x128xf32>,
    %c0_i32_8 = arith.constant 0 : i32
    %12 = arith.cmpi eq, %arg1, %c0_i32_8 : i32
    %13 = arith.extui %12 : i1 to i32
    %c0_i32_9 = arith.constant 0 : i32
    %14 = arith.cmpi ne, %13, %c0_i32_9 : i32
    scf.if %14 {
      %c0_10 = arith.constant 0 : index
      %c0_11 = arith.constant 0 : index
      %15 = vector.load %arg5[%c0_10, %c0_11] : memref<8x128xf32, #tpu.memory_space<vmem>>, vector<8x128xf32>
      %c0_12 = arith.constant 0 : index
      %c0_13 = arith.constant 0 : index
      %16 = vector.load %arg4[%c0_12, %c0_13] : memref<8x128xf32, #tpu.memory_space<vmem>>, vector<8x128xf32>
      tpu.vector_store %arg4[%c0_12, %c0_13], %15 {strides = array<i32>} : memref<8x128xf32, #tpu.memory_space<vmem>>, vector<8x128xf32>,
    } else {
    }
    return
  }
  func.func @transform_0(%arg0: i32, %arg1: i32) -> (i32, i32) {
    %c1_i32 = arith.constant 1 : i32
    %0 = arith.muli %arg0, %c1_i32 : i32
    %1 = arith.addi %0, %arg1 : i32
    %c0_i32 = arith.constant 0 : i32
    %c0_i32_0 = arith.constant 0 : i32
    return %1, %c0_i32 : i32, i32
  }
  func.func @transform_1(%arg0: i32, %arg1: i32) -> (i32, i32) {
    %c1_i32 = arith.constant 1 : i32
    %0 = arith.muli %arg0, %c1_i32 : i32
    %1 = arith.addi %0, %arg1 : i32
    %c0_i32 = arith.constant 0 : i32
    %c0_i32_0 = arith.constant 0 : i32
    return %1, %c0_i32 : i32, i32
  }
  func.func @transform_2(%arg0: i32, %arg1: i32) -> (i32, i32) {
    %c0_i32 = arith.constant 0 : i32
    %c0_i32_0 = arith.constant 0 : i32
    return %arg0, %c0_i32 : i32, i32
  }
}

</mosaic_0001>

<bundles_post_ra>
// kernel: tpu_custom_call.1
= control target key start
LH: loop header
LB: loop body
LE: loop exit
PB: predicated region body
PF: predicated region fallthrough
CT: control target
= control target key end

     0   :  { %7 = vsyncpa [#allocation4], 0  ;;  %s820_s0 = inlined_call_operand.hbm [shape: f32[16,128], index: 0, kind: input, shape index: {}]   ;;  %s821_s1 = inlined_call_operand.hbm [shape: f32[16,128], index: 1, kind: input, shape index: {}]   ;;  %s822_s2 = inlined_call_operand.hbm [shape: f32[16,128], index: 2, kind: output, shape index: {}]  }
   0x1   :  { %9 = vsyncpa [#allocation4 + $0x1], 0 }
   0x2   :  { %10 = vsyncpa [#allocation7], 0 }
   0x3   :  { %12 = vsyncpa [#allocation7 + $0x1], 0 }
   0x4   :  { %13 = vsyncpa [#allocation5], 0 }
   0x5   :  { %15 = vsyncpa [#allocation5 + $0x1], 0  ;;  %s600_s9 = smov 0   ;;  %s602_s10 = smov 0  }
   0x6   :  { %s604_s11 = smov 0   ;;  %s606_s12 = smov 0  }
   0x7   :  { %s608_s13 = smov 0   ;;  %s610_s14 = smov 0  }
   0x8 LB: > { %s351_s15 = sadd.s32 4294967295, %s580_s14   ;;  %s352_s16 = sadd.s32 4294967294, %s580_s14   ;;  %s580_s14 = sphi %s610_s14, %s21_s14   ;;  %s576_s13 = sphi %s608_s13, %s842_s13   ;;  %s572_s12 = sphi %s606_s12, %s841_s12   ;;  %s568_s11 = sphi %s604_s11, %s840_s11   ;;  %s564_s10 = sphi %s602_s10, %s839_s10   ;;  %s560_s9 = sphi %s600_s9, %s838_s9  }
   0x9   : > { %s33_s17 = sadd.s32 1, %s576_s13  ;;  %s42_s18 = sadd.s32 1, %s568_s11 }
   0xa   : > { %p35_p0 = scmp.ge.s32.totalorder %s33_s17, 2  ;;  %p49_p1 = scmp.ne.s32.totalorder %s568_s11, %s564_s10 }
   0xb   : > { %p50_p2 = scmp.eq.s32.totalorder %s580_s14, 0  ;;  %p55_p3 = scmp.ne.s32.totalorder %s564_s10, %s560_s9 }
   0xc   : > { %s844_s17 = smov (%p35_p0, %s33_s17), 0  ;;  %p56_p5 = scmp.eq.s32.totalorder %s351_s15, 0 }
   0xd   : > { %p641_p4 = por %p50_p2, %p49_p1  ;;  %s39_s20 = ssub.s32 %s576_s13, %s844_s17 }
   0xe   : > { %p107_p6 = scmp.eq.s32.totalorder %s351_s15, 1  ;;  %p40_p7 = scmp.eq.s32.totalorder %s39_s20, 0 }
   0xf   : > { %p647_p8 = por %p56_p5, %p55_p3  ;;  %p113_p10 = scmp.eq.s32.totalorder %s352_s16, 1 }
  0x10   : > { %p651_p9 = por %p107_p6, %p49_p1  ;;  %p384_p13 = scmp.lt.s32.totalorder %s580_s14, 2 }
  0x11   : > { %s826_s21 = scalar_select %p647_p8, 1, 0 }
  0x12   : > { %s827_s22 = scalar_select %p651_p9, 1, 0 }
  0x13   : > { %s656_s23 = scalar_select %p40_p7, %s568_s11, %s42_s18  }
  0x14   : > { %p658_p11 = por %p113_p10, %p55_p3  ;;  %s665_s25 = sand.u32 1, %s568_s11  }
  0x15   : > { %s355_s26 = sshll.u32 %s665_s25, 3  ;;  %s356_s27 = sshll.u32 %s576_s13, 7 }
  0x16   : > { %s828_s24 = scalar_select %p658_p11, 1, 0 }
  0x17   : > { %s674_s30 = scalar_lea.hbm %s820_s0, %s356_s27  ;;  %s137_s3 = scalar_lea.vmem [#allocation3], %s355_s26 }
  0x18   : > { %s145_s4 = sshll.u32 %s137_s3, 4  ;;  %p682_p0 = pnand %p384_p13, %p641_p4  ;;  %s678_s4 = int_to_ptr.vmem [resolvable:$true] %s145_s4 }
  0x19   : > { %s134_s6 = scalar_lea.sflag [#allocation4], %s665_s25  ;;  %s434_s7 = scalar_lea.hbm %s674_s30, 128 }
  0x1a   : > { %p435_p3 = scmp.ne.s32.totalorder %s674_s30, %s434_s7  ;;  %p436_p5 = pneg %p682_p0 }
  0x1b   : > { %s439_s16 = scalar_lea.hbm %s820_s0, 256  ;;  %p440_p4 = scmp.lt.u32.totalorder %s674_s30, %s820_s0 }
  0x1c   : > { %p437_p6 = pnand %p436_p5, %p435_p3  ;;  %p441_p10 = scmp.lt.u32.totalorder %s439_s16, %s434_s7 }
  0x1d   : > { %p443_p12 = scmp.lt.u32.totalorder %s434_s7, %s674_s30 }
  0x1e   : > { %p438_p7 = pneg %p437_p6  ;;  %p442_p13 = por %p441_p10, %p440_p4 }
  0x20   : > { %p444_p1 = por %p443_p12, %p442_p13 }
  0x22   : > { %p445_p2 = pnand %p444_p1, %p438_p7 }
  0x24   : > { %448 = shalt.err (!%p445_p2)
}
  0x25   : > { %s449_s20 = scalar_lea.vmem %s678_s4, 128  ;;  %s582_s28 = smov [#allocation3]  }
  0x26   : > { %p450_p3 = scmp.ne.s32.totalorder %s678_s4, %s449_s20  ;;  %s454_s29 = sshll.u32 %s582_s28, 4  ;;  %s455_s29 = int_to_ptr.vmem [resolvable:$false] %s454_s29 }
  0x27   : > { %s456_s3 = scalar_lea.vmem %s455_s29, 256  ;;  %p457_p9 = scmp.lt.s32.totalorder %s678_s4, %s455_s29 }
  0x28   : > { %p452_p6 = pnand %p450_p3, %p436_p5  ;;  %p458_p4 = scmp.lt.s32.totalorder %s456_s3, %s449_s20 }
  0x2a   : > { %p453_p11 = pneg %p452_p6  ;;  %p459_p10 = por %p458_p4, %p457_p9 }
  0x2c   : > { %p460_p12 = pnand %p459_p10, %p453_p11 }
  0x2e   : > { %463 = shalt.err (!%p460_p12)
}
  0x2f   : > { %376 = dma.hbm_to_vmem [thread:$0]  (!%p682_p0), %s674_s30, 128, %s678_s4, %s134_s6  }
  0x30   : > { %p830_p1 = scmp.lt.s32.totalorder %s580_s14, 3  ;;  %p831_p2 = scmp.ge.s32.totalorder %s580_s14, 1 }
  0x31   : > { %s727_s16 = scalar_lea.hbm %s821_s1, %s356_s27  ;;  %s156_s18 = scalar_lea.vmem [#allocation6], %s355_s26 }
  0x32   : > { %p718_p7 = pnand %p831_p2, %p830_p1  ;;  %s164_s19 = sshll.u32 %s156_s18, 4  ;;  %s165_s19 = int_to_ptr.vmem [resolvable:$true] %s164_s19 }
  0x33   : > { %s153_s30 = scalar_lea.sflag [#allocation7], %s665_s25  ;;  %s464_s4 = scalar_lea.hbm %s727_s16, 128 }
  0x34   : > { %s832_s7 = scalar_select %p718_p7, 1, 0 }
  0x35   : > { %p465_p9 = scmp.ne.s32.totalorder %s727_s16, %s464_s4  ;;  %s469_s27 = scalar_lea.hbm %s821_s1, 256 }
  0x36   : > { %p470_p3 = scmp.lt.u32.totalorder %s727_s16, %s821_s1  ;;  %p471_p6 = scmp.lt.u32.totalorder %s469_s27, %s464_s4 }
  0x37   : > { %p467_p11 = pnand %p465_p9, %p436_p5  ;;  %p473_p10 = scmp.lt.u32.totalorder %s464_s4, %s727_s16 }
  0x38   : > { %p472_p4 = por %p471_p6, %p470_p3 }
  0x39   : > { %p468_p13 = pneg %p467_p11 }
  0x3a   : > { %p474_p12 = por %p473_p10, %p472_p4 }
  0x3c   : > { %p475_p1 = pnand %p474_p12, %p468_p13 }
  0x3e   : > { %478 = shalt.err (!%p475_p1)
}
  0x3f   : > { %s479_s25 = scalar_lea.vmem %s165_s19, 128  ;;  %s583_s26 = smov [#allocation6]  }
  0x40   : > { %p480_p2 = scmp.ne.s32.totalorder %s165_s19, %s479_s25  ;;  %s484_s3 = sshll.u32 %s583_s26, 4  ;;  %s485_s3 = int_to_ptr.vmem [resolvable:$false] %s484_s3 }
  0x41   : > { %s486_s8 = scalar_lea.vmem %s485_s3, 256  ;;  %p487_p8 = scmp.lt.s32.totalorder %s165_s19, %s485_s3 }
  0x42   : > { %p482_p9 = pnand %p480_p2, %p436_p5  ;;  %p488_p7 = scmp.lt.s32.totalorder %s486_s8, %s479_s25 }
  0x44   : > { %p483_p11 = pneg %p482_p9  ;;  %p489_p3 = por %p488_p7, %p487_p8 }
  0x46   : > { %p490_p6 = pnand %p489_p3, %p483_p11 }
  0x48   : > { %493 = shalt.err (!%p490_p6)
}
  0x49   : > { %379 = dma.hbm_to_vmem [thread:$0]  (!%p682_p0), %s727_s16, 128, %s165_s19, %s153_s30  }
  0x4a   : > { %p833_p13 = scmp.ne.s32.totalorder %s832_s7, 0 }
  0x4b   : > { %s754_s15 = sand.u32 (!%p833_p13), 1, %s564_s10   ;;  %p834_p5 = scmp.ne.s32.totalorder (!%p833_p13), %s826_s21, 0 }
  0x4c   : > { %173 = sbr.rel (%p833_p13) target bundleno = 112 (0x70), region = 28  ;;  %s360_s18 = sshll.u32 (!%p833_p13), %s754_s15, 3 }
  0x4d   : > { %s176_s4 = scalar_lea.sflag (!%p833_p13), [#allocation4], %s754_s15  ;;  %s179_s6 = scalar_lea.vmem (!%p833_p13), [#allocation3], %s360_s18 }
  0x53   : > { %547 = dma.done.wait (%p834_p5), %s176_s4, 128  }
  0x54   : > { %549 = vsyncadd (%p834_p5), %s176_s4, 4294967168  ;;  %s185_s5 = scalar_lea.sflag [#allocation7], %s754_s15  ;;  %s188_s16 = scalar_lea.vmem [#allocation6], %s360_s18 }
  0x55   : > { %551 = dma.done.wait (%p834_p5), %s185_s5, 128  }
  0x56   : > { %553 = vsyncadd (%p834_p5), %s185_s5, 4294967168  ;;  %v221_v0 = vld [vmem:[%s179_s6] sm:$0xff]  ;;  %v222_v1 = vld [vmem:[%s188_s16] sm:$0xff]  ;;  %s213_s7 = scalar_lea.vmem [#allocation8], %s360_s18  ;;  %s364_s30 = sshll.u32 %s572_s12, 7 }
  0x57   : > { %s248_s19 = sshll.u32 %s213_s7, 4  ;;  %v223_v2 = vsub.f32 %v221_v0, %v222_v1  ;;  %s773_s21 = scalar_lea.hbm %s822_s2, %s364_s30  ;;  %s768_s19 = int_to_ptr.vmem [resolvable:$true] %s248_s19 }
  0x58   : > { %s235_s28 = scalar_lea.sflag [#allocation5], %s754_s15  ;;  %s494_s29 = scalar_lea.vmem %s768_s19, 128 }
  0x59   : > { %v224_v3 = vmul.f32 %v223_v2, %v223_v2  ;;  %p495_p8 = scmp.ne.s32.totalorder %s768_s19, %s494_s29  ;;  %p835_p0 = scmp.ne.s32.totalorder %s827_s22, 0 }
  0x5a   : > { %s584_s12 = smov [#allocation8]  }
  0x5b   : > { %233 = vst [vmem:[%s213_s7] sm:$0xff] %v224_v3  ;;  %p496_p7 = pnand %p495_p8, %p835_p0  ;;  %s498_s25 = sshll.u32 %s584_s12, 4  ;;  %s499_s25 = int_to_ptr.vmem [resolvable:$false] %s498_s25 }
  0x5c   : > { %s500_s26 = scalar_lea.vmem %s499_s25, 256  ;;  %p501_p10 = scmp.lt.s32.totalorder %s768_s19, %s499_s25 }
  0x5d   : > { %p497_p4 = pneg %p496_p7  ;;  %p502_p12 = scmp.lt.s32.totalorder %s500_s26, %s494_s29 }
  0x5f   : > { %p503_p1 = por %p502_p12, %p501_p10 }
  0x61   : > { %p504_p2 = pnand %p503_p1, %p497_p4 }
  0x63   : > { %507 = shalt.err (!%p504_p2)
}
  0x64   : > { %s508_s3 = scalar_lea.hbm %s773_s21, 128  ;;  %s512_s18 = scalar_lea.hbm %s822_s2, 256 }
  0x65   : > { %p509_p9 = scmp.ne.s32.totalorder %s773_s21, %s508_s3  ;;  %p513_p6 = scmp.lt.u32.totalorder %s773_s21, %s822_s2 }
  0x66   : > { %p514_p13 = scmp.lt.u32.totalorder %s512_s18, %s508_s3  ;;  %p516_p8 = scmp.lt.u32.totalorder %s508_s3, %s773_s21 }
  0x67   : > { %p510_p11 = pnand %p509_p9, %p835_p0 }
  0x68   : > { %p515_p5 = por %p514_p13, %p513_p6 }
  0x69   : > { %p511_p3 = pneg %p510_p11 }
  0x6a   : > { %p517_p7 = por %p516_p8, %p515_p5 }
  0x6c   : > { %p518_p4 = pnand %p517_p7, %p511_p3 }
  0x6e   : > { %521 = shalt.err (!%p518_p4)
}
  0x6f   : > { %371 = dma.vmem_to_hbm [thread:$0]  (%p835_p0), %s768_s19, 128, %s773_s21, %s235_s28  }
  0x70 PF: > { %s260_s5 = sand.u32 1, %s560_s9   ;;  %p836_p10 = scmp.ne.s32.totalorder %s828_s24, 0 }
  0x71   : > { %p837_p12 = scmp.ge.s32.totalorder %s580_s14, 2  ;;  %s261_s16 = scalar_lea.sflag [#allocation5], %s260_s5 }
  0x73   : > { %p381_p1 = pnand %p837_p12, %p836_p10 }
  0x75   : > { %555 = dma.done.wait (!%p381_p1), %s261_s16, 128  }
  0x76   : > { %557 = vsyncadd (!%p381_p1), %s261_s16, 4294967168  ;;  %s21_s14 = sadd.s32 1, %s580_s14   ;;  %s838_s9 = smov %s564_s10 }
  0x77   : > { %p18_p2 = scmp.ge.s32.totalorder %s21_s14, 4   ;;  %s839_s10 = smov %s568_s11 }
  0x78   : > { %s840_s11 = smov %s656_s23  ;;  %s841_s12 = smov %s576_s13 }
  0x79   : > { %s842_s13 = smov %s844_s17  ;;  %20 = sbr.rel (!%p18_p2) target bundleno = 8 (0x8), region = 94 }
  0x80   :  { %266 = vsyncpa [#allocation4], 1 }
  0x81   :  { %268 = vsyncpa [#allocation4 + $0x1], 1 }
  0x82   :  { %269 = vsyncpa [#allocation7], 1 }
  0x83   :  { %271 = vsyncpa [#allocation7 + $0x1], 1 }
  0x84   :  { %272 = vsyncpa [#allocation5], 1 }
  0x85   :  { %274 = vsyncpa [#allocation5 + $0x1], 1 }

</bundles_post_ra>
